<compile_context>
chip_gen: v7x
topology: tpu7x:2x2x1
jax: 0.10.0
libtpu: 0.0.40
codegen_flags: <defaults>
</compile_context>

<pallas_src>
import functools

import jax
import jax.numpy as jnp
from jax.experimental import pallas as pl
from jax.experimental.pallas import tpu as pltpu

_VMEM_LIMIT = 40 * 1024 * 1024  # modest cap; safe on v5e/v6e (128 MiB) and v7x (64 MiB)


def _round_up(x, m):
    return (x + m - 1) // m * m


def _pad2(x, rows, cols, val=0.0):
    r, c = x.shape
    if r == rows and c == cols:
        return x
    return jnp.pad(x, ((0, rows - r), (0, cols - c)), constant_values=val)


def _pick_tile(dim):
    """Choose the largest tile in {512,256,128} whose zero-padding is <=1.25x."""
    base = _round_up(dim, 128)
    for cand in (512, 256, 128):
        if _round_up(dim, cand) <= 1.25 * base:
            return cand, _round_up(dim, cand)
    return 128, base


# ----------------------------- tiled GEMM kernel -----------------------------

def _gemm_kernel(*refs, relu, has_add):
    """Tiled GEMM with K-accumulation; epilogue = +bias (+identity) (+ReLU), bf16 out."""
    if has_add:
        a_ref, w_ref, b_ref, add_ref, o_ref, acc_ref = refs
    else:
        a_ref, w_ref, b_ref, o_ref, acc_ref = refs

    @pl.when(pl.program_id(2) == 0)
    def _():
        acc_ref[...] = jnp.zeros_like(acc_ref)

    acc_ref[...] += jnp.dot(a_ref[...], w_ref[...],
                            preferred_element_type=jnp.float32)

    @pl.when(pl.program_id(2) == pl.num_programs(2) - 1)
    def _():
        y = acc_ref[...] + b_ref[...]
        if has_add:
            y = y + add_ref[...].astype(jnp.float32)
        if relu:
            y = jnp.maximum(y, 0.0)
        o_ref[...] = y.astype(o_ref.dtype)


@functools.partial(jax.jit, static_argnames=("relu",))
def matmul_bias_act(a, w, b, addend=None, relu=False):
    """(M,K) @ (K,N) + bias [+ addend] [+ ReLU] — bf16 MXU GEMM, f32 accumulate, bf16 out."""
    m, k = a.shape
    n = w.shape[1]
    a = a.astype(jnp.bfloat16)
    w = w.astype(jnp.bfloat16)
    b = b.astype(jnp.float32)

    mp0 = _round_up(m, 8)
    tm = min(512, mp0)
    mp = _round_up(mp0, tm)
    tk, kp = _pick_tile(k)
    tn, np_ = _pick_tile(n)

    a_p = _pad2(a, mp, kp)
    w_p = _pad2(w, kp, np_)
    b_p = _pad2(b, 1, np_)

    has_add = addend is not None
    in_specs = [
        pl.BlockSpec((tm, tk), lambda i, j, kk: (i, kk)),
        pl.BlockSpec((tk, tn), lambda i, j, kk: (kk, j)),
        pl.BlockSpec((1, tn), lambda i, j, kk: (0, j)),
    ]
    operands = [a_p, w_p, b_p]
    if has_add:
        in_specs.append(pl.BlockSpec((tm, tn), lambda i, j, kk: (i, j)))
        operands.append(_pad2(addend.astype(jnp.bfloat16), mp, np_))

    out = pl.pallas_call(
        functools.partial(_gemm_kernel, relu=relu, has_add=has_add),
        out_shape=jax.ShapeDtypeStruct((mp, np_), jnp.bfloat16),
        grid=(mp // tm, np_ // tn, kp // tk),
        in_specs=in_specs,
        out_specs=pl.BlockSpec((tm, tn), lambda i, j, kk: (i, j)),
        scratch_shapes=[pltpu.VMEM((tm, tn), jnp.float32)],
        compiler_params=pltpu.CompilerParams(
            dimension_semantics=("parallel", "parallel", "arbitrary"),
            vmem_limit_bytes=_VMEM_LIMIT,
        ),
    )(*operands)
    return out[:m, :n]


# ------------------- fused 3x3 stride-1 conv ("tap" kernel) ------------------
#
# The padded NHWC plane is flattened per batch to (HP*WP8, C) rows (WP8 = padded
# width rounded to 8).  Output row r = i*WP8 + j reads input rows r + ki*WP8 + kj
# for the 9 taps, so each M-tile only needs ONE contiguous row-slab (tile + halo),
# manually DMA'd from HBM with double buffering.  Garbage columns j >= OW are
# computed and discarded (tiny overhead) — the input is read exactly once.

def _conv3x3_s1_kernel(x_hbm, w_ref, b_ref, o_ref, xbuf, sem,
                       *, tm, slab, wp8, relu):
    bidx = pl.program_id(0)
    i = pl.program_id(1)
    nm = pl.num_programs(1)

    def _start(step, slot):
        pltpu.make_async_copy(
            x_hbm.at[bidx, pl.ds(step * tm, slab), :],
            xbuf.at[slot],
            sem.at[slot],
        ).start()

    @pl.when(i == 0)
    def _():
        _start(0, 0)

    slot = i % 2
    pltpu.make_async_copy(
        x_hbm.at[bidx, pl.ds(i * tm, slab), :],
        xbuf.at[slot],
        sem.at[slot],
    ).wait()

    @pl.when(i + 1 < nm)
    def _():
        _start(i + 1, 1 - slot)

    xv = xbuf[slot]                                # (slab, C) bf16, read once
    acc = None
    for t in range(9):
        ki, kj = divmod(t, 3)
        d = ki * wp8 + kj
        p = jnp.dot(xv, w_ref[t], preferred_element_type=jnp.float32)  # (slab, Cout)
        ps = jax.lax.slice(p, (d, 0), (d + tm, p.shape[1]))
        acc = ps if acc is None else acc + ps
    y = acc + b_ref[...]
    if relu:
        y = jnp.maximum(y, 0.0)
    o_ref[0] = y.astype(o_ref.dtype)


@functools.partial(jax.jit, static_argnames=("relu",))
def conv3x3_s1(x_nhwc, w9, bias, relu=True):
    """3x3 stride-1 pad-1 conv + folded BN (+ReLU) without im2col."""
    B, H, W, C = x_nhwc.shape
    cout = w9.shape[2]
    OH, OW = H, W
    HP = H + 2
    WP8 = _round_up(W + 2, 8)
    xp = jnp.pad(x_nhwc.astype(jnp.bfloat16),
                 ((0, 0), (1, 1), (1, WP8 - W - 1), (0, 0)))
    xf = xp.reshape(B, HP * WP8, C)

    M = OH * WP8                       # computed rows per batch (cols >= OW discarded)
    tm = min(512, M)
    Mp = _round_up(M, tm)
    nm = Mp // tm
    slab = _round_up(tm + 2 * WP8 + 2, 8)
    rows_needed = (nm - 1) * tm + slab
    xf = jnp.pad(xf, ((0, 0), (0, rows_needed - HP * WP8), (0, 0)))

    out = pl.pallas_call(
        functools.partial(_conv3x3_s1_kernel, tm=tm, slab=slab, wp8=WP8, relu=relu),
        out_shape=jax.ShapeDtypeStruct((B, Mp, cout), jnp.bfloat16),
        grid=(B, nm),
        in_specs=[
            pl.BlockSpec(memory_space=pl.ANY),                 # flattened plane (HBM)
            pl.BlockSpec((9, C, cout), lambda b, i: (0, 0, 0)),  # resident weights
            pl.BlockSpec((1, cout), lambda b, i: (0, 0)),
        ],
        out_specs=pl.BlockSpec((1, tm, cout), lambda b, i: (b, i, 0)),
        scratch_shapes=[
            pltpu.VMEM((2, slab, C), jnp.bfloat16),            # double-buffered slab
            pltpu.SemaphoreType.DMA((2,)),
        ],
        compiler_params=pltpu.CompilerParams(
            dimension_semantics=("parallel", "arbitrary"),
            vmem_limit_bytes=_VMEM_LIMIT,
        ),
    )(xf, w9.astype(jnp.bfloat16), bias.astype(jnp.float32))
    return out[:, :M, :].reshape(B, OH, WP8, cout)[:, :, :OW, :]


# --------------------------- fc + L2 normalize kernel ------------------------

def _fc_l2norm_kernel(x_ref, w_ref, b_ref, o_ref):
    y = jnp.dot(x_ref[...], w_ref[...], preferred_element_type=jnp.float32)
    y = y + b_ref[...]
    # F.normalize(y, p=2, dim=1) via rsqrt (EUP slot) instead of sqrt + divide.
    sq = jnp.sum(y * y, axis=1, keepdims=True)
    o_ref[...] = y * jax.lax.rsqrt(jnp.maximum(sq, 1e-24))


@jax.jit
def fc_l2_normalize(x, w, b):
    m, k = x.shape
    n = w.shape[1]
    mp = _round_up(m, 8)
    xp = _pad2(x.astype(jnp.bfloat16), mp, k)
    wb = w.astype(jnp.bfloat16)
    out = pl.pallas_call(
        _fc_l2norm_kernel,
        out_shape=jax.ShapeDtypeStruct((mp, n), jnp.float32),
        grid=(1,),
        in_specs=[
            pl.BlockSpec((mp, k), lambda i: (0, 0)),
            pl.BlockSpec((k, n), lambda i: (0, 0)),
            pl.BlockSpec((1, n), lambda i: (0, 0)),
        ],
        out_specs=pl.BlockSpec((mp, n), lambda i: (0, 0)),
        compiler_params=pltpu.CompilerParams(vmem_limit_bytes=_VMEM_LIMIT),
    )(xp, wb, b.astype(jnp.float32))
    return out[:m]


# ------------------------------ JAX glue ops --------------------------------

def im2col(x_nhwc, kh, kw, stride, pad):
    """Extract conv patches ordered (c, ki, kj) to match PyTorch weight flatten."""
    b, h, w, c = x_nhwc.shape
    xp = jnp.pad(x_nhwc, ((0, 0), (pad, pad), (pad, pad), (0, 0)))
    oh = (h + 2 * pad - kh) // stride + 1
    ow = (w + 2 * pad - kw) // stride + 1
    cols = []
    for ki in range(kh):
        for kj in range(kw):
            cols.append(
                xp[:, ki:ki + stride * (oh - 1) + 1:stride,
                      kj:kj + stride * (ow - 1) + 1:stride, :]
            )
    p = jnp.stack(cols, axis=-1)                      # (B, OH, OW, C, kh*kw)
    p = p.reshape(b * oh * ow, c * kh * kw)           # feature = c*kh*kw + ki*kw + kj
    return p, oh, ow


@jax.jit
def maxpool_3x3_s2_p1(x_nhwc):
    # Per perf review: fold the 9 shifted windows with jnp.maximum (XLA fuses this);
    # the previous Pallas kernel forced a 9x stacked HBM copy for a trivial max.
    b, h, w, c = x_nhwc.shape
    xp = jnp.pad(x_nhwc, ((0, 0), (1, 1), (1, 1), (0, 0)),
                 constant_values=-jnp.inf)
    oh = (h + 2 - 3) // 2 + 1
    ow = (w + 2 - 3) // 2 + 1
    out = None
    for ki in range(3):
        for kj in range(3):
            win = xp[:, ki:ki + 2 * (oh - 1) + 1:2,
                        kj:kj + 2 * (ow - 1) + 1:2, :]
            out = win if out is None else jnp.maximum(out, win)
    return out


# --------------------------- parameter construction -------------------------

class KeyGen:
    def __init__(self, seed=0):
        self._key = jax.random.PRNGKey(seed)
        self._i = 0

    def next(self):
        self._i += 1
        return jax.random.fold_in(self._key, self._i)


def make_conv_bn(kg, cin, cout, kh, kw):
    """Conv2d(no bias) + BatchNorm2d(eval) folded into bf16 GEMM/tap weights + f32 bias."""
    fan_in = cin * kh * kw
    w = jax.random.normal(kg.next(), (cout, cin, kh, kw), jnp.float32) * jnp.sqrt(2.0 / fan_in)
    gamma = 1.0 + 0.1 * jax.random.normal(kg.next(), (cout,), jnp.float32)
    beta = 0.05 * jax.random.normal(kg.next(), (cout,), jnp.float32)
    rmean = 0.05 * jax.random.normal(kg.next(), (cout,), jnp.float32)
    rvar = 1.0 + 0.1 * jax.random.uniform(kg.next(), (cout,), jnp.float32)
    scale = gamma / jnp.sqrt(rvar + 1e-5)
    w_s = w * scale[:, None, None, None]
    p = {
        "wmat": w_s.reshape(cout, fan_in).T.astype(jnp.bfloat16),   # (C*kh*kw, Cout)
        "bias": (beta - rmean * scale).reshape(1, cout),
        "kh": kh,
        "kw": kw,
    }
    if kh == 3 and kw == 3:
        # tap layout: (9, Cin, Cout) with tap index t = ki*3 + kj
        p["w9"] = jnp.transpose(w_s, (2, 3, 1, 0)).reshape(9, cin, cout).astype(jnp.bfloat16)
    return p


def init_params(embedding_dim=256, seed=0):
    # NOTE: the PyTorch module freezes most backbone params (requires_grad=False);
    # that is a training-time detail and does not change the forward pass.
    kg = KeyGen(seed)
    params = {"stem": make_conv_bn(kg, 3, 64, 7, 7)}
    cfg = [(64, 3, 1), (128, 4, 2), (256, 6, 2), (512, 3, 2)]   # ResNet50 stages
    inplanes = 64
    stages = []
    for planes, nblocks, stride in cfg:
        stage = []
        for bi in range(nblocks):
            s = stride if bi == 0 else 1
            bp = {
                "stride": s,
                "conv1": make_conv_bn(kg, inplanes, planes, 1, 1),
                "conv2": make_conv_bn(kg, planes, planes, 3, 3),
                "conv3": make_conv_bn(kg, planes, planes * 4, 1, 1),
            }
            if s != 1 or inplanes != planes * 4:
                bp["downsample"] = make_conv_bn(kg, inplanes, planes * 4, 1, 1)
            inplanes = planes * 4
            stage.append(bp)
        stages.append(stage)
    params["stages"] = stages
    fan_in = 512 * 4  # 2048 = backbone.fc.in_features
    params["fc_w"] = jax.random.normal(kg.next(), (fan_in, embedding_dim), jnp.float32) / jnp.sqrt(
        float(fan_in)
    )
    params["fc_b"] = 0.01 * jax.random.normal(kg.next(), (1, embedding_dim), jnp.float32)
    return params


# ------------------------------ forward pass --------------------------------

def conv_bn(x_nhwc, p, stride, pad, relu, addend=None):
    b = x_nhwc.shape[0]
    kh, kw = p["kh"], p["kw"]
    cout = p["bias"].shape[1]
    if kh == 1 and kw == 1:
        # 1x1 conv: no im2col, just (strided) reshape.
        xs = x_nhwc[:, ::stride, ::stride, :] if stride > 1 else x_nhwc
        oh, ow = xs.shape[1], xs.shape[2]
        patches = xs.reshape(b * oh * ow, xs.shape[3]).astype(jnp.bfloat16)
        y = matmul_bias_act(patches, p["wmat"], p["bias"], addend=addend, relu=relu)
        return y.reshape(b, oh, ow, cout)
    if kh == 3 and stride == 1:
        # fused tap conv, reads the input exactly once (no im2col materialization)
        return conv3x3_s1(x_nhwc.astype(jnp.bfloat16), p["w9"], p["bias"], relu=relu)
    # TODO(synk): stride-2 3x3/7x7 convs still use im2col patch gathering in JAX.
    patches, oh, ow = im2col(x_nhwc.astype(jnp.bfloat16), kh, kw, stride, pad)
    y = matmul_bias_act(patches, p["wmat"], p["bias"], addend=addend, relu=relu)
    return y.reshape(b, oh, ow, cout)


def bottleneck(x_nhwc, p):
    s = p["stride"]
    out = conv_bn(x_nhwc, p["conv1"], 1, 0, True)
    out = conv_bn(out, p["conv2"], s, 1, True)
    if "downsample" in p:
        identity = conv_bn(x_nhwc, p["downsample"], s, 0, False)
    else:
        identity = x_nhwc
    b, h, w, c = identity.shape
    ident2d = identity.reshape(b * h * w, c)
    # conv3 + BN3 with residual add + ReLU fused into the GEMM epilogue (bf16 addend).
    return conv_bn(out, p["conv3"], 1, 0, True, addend=ident2d)


def embedding_net_forward(params, x_nchw):
    x = jnp.transpose(x_nchw.astype(jnp.float32), (0, 2, 3, 1))   # NCHW -> NHWC
    x = conv_bn(x, params["stem"], 2, 3, True)                    # conv1 + bn1 + relu
    x = maxpool_3x3_s2_p1(x)                                      # maxpool
    for stage in params["stages"]:                                # layer1..layer4
        for bp in stage:
            x = bottleneck(x, bp)
    # TODO(synk): adaptive avg-pool stays plain-JAX glue.
    feat = jnp.mean(x.astype(jnp.float32), axis=(1, 2))
    emb = fc_l2_normalize(feat, params["fc_w"], params["fc_b"])   # fc + F.normalize in Pallas
    return emb


if __name__ == "__main__":
    params = init_params(embedding_dim=256, seed=0)
    x = jax.random.normal(jax.random.PRNGKey(0), (2, 3, 32, 32), jnp.float32)
    out = embedding_net_forward(params, x)
    out = jax.block_until_ready(out)
    assert out.shape == (2, 256), out.shape
    assert bool(jnp.all(jnp.isfinite(out)))
    norms = jnp.linalg.norm(out, axis=1)
    assert bool(jnp.all(jnp.abs(norms - 1.0) < 1e-3)), norms
    print("KERNEL_OK")
</pallas_src>

<mosaic_0001>
module attributes {stable_mosaic.version = 11 : i64} {
  func.func @_gemm_kernel(%arg0: i32, %arg1: i32, %arg2: i32, %arg3: memref<512x256xbf16, #tpu.memory_space<vmem>>, %arg4: memref<256x128xbf16, #tpu.memory_space<vmem>>, %arg5: memref<1x128xf32, #tpu.memory_space<vmem>>, %arg6: memref<512x128xbf16, #tpu.memory_space<vmem>>, %arg7: memref<512x128xf32, #tpu.memory_space<vmem>>) attributes {dimension_semantics = [#tpu.dimension_semantics<parallel>, #tpu.dimension_semantics<parallel>, #tpu.dimension_semantics<arbitrary>], iteration_bounds = array<i64: 1, 1, 1>, scalar_prefetch = 0 : i64, scratch_operands = 1 : i64, tpu.core_type = #tpu.core_type<tc>, window_params = [{transform_indices = @transform_0, window_bounds = array<i64: 512, 256>}, {transform_indices = @transform_1, window_bounds = array<i64: 256, 128>}, {transform_indices = @transform_2, window_bounds = array<i64: 1, 128>}, {transform_indices = @transform_3, window_bounds = array<i64: 512, 128>}]} {
    %c0_i32 = arith.constant 0 : i32
    %0 = arith.cmpi eq, %arg2, %c0_i32 : i32
    %1 = arith.extui %0 : i1 to i32
    %c0_i32_0 = arith.constant 0 : i32
    %2 = arith.cmpi ne, %1, %c0_i32_0 : i32
    scf.if %2 {
      %cst_10 = arith.constant 0.000000e+00 : f32
      %12 = vector.broadcast %cst_10 : f32 to vector<512x128xf32>
      %c0_11 = arith.constant 0 : index
      %c0_12 = arith.constant 0 : index
      %13 = vector.load %arg7[%c0_11, %c0_12] : memref<512x128xf32, #tpu.memory_space<vmem>>, vector<512x128xf32>
      tpu.vector_store %arg7[%c0_11, %c0_12], %12 {strides = array<i32>} : memref<512x128xf32, #tpu.memory_space<vmem>>, vector<512x128xf32>,
    } else {
    }
    %c0 = arith.constant 0 : index
    %c0_1 = arith.constant 0 : index
    %3 = vector.load %arg7[%c0, %c0_1] : memref<512x128xf32, #tpu.memory_space<vmem>>, vector<512x128xf32>
    %c0_2 = arith.constant 0 : index
    %c0_3 = arith.constant 0 : index
    %4 = vector.load %arg3[%c0_2, %c0_3] : memref<512x256xbf16, #tpu.memory_space<vmem>>, vector<512x256xbf16>
    %c0_4 = arith.constant 0 : index
    %c0_5 = arith.constant 0 : index
    %5 = vector.load %arg4[%c0_4, %c0_5] : memref<256x128xbf16, #tpu.memory_space<vmem>>, vector<256x128xbf16>
    %cst = arith.constant dense<0.000000e+00> : vector<512x128xf32>
    %6 = tpu.matmul %4, %5, %cst {dimension_numbers = #tpu.dot_dimension_numbers<[1], [0], [0], [1], [0, 0, 1, 1], [], []>} : vector<512x256xbf16>, vector<256x128xbf16>, vector<512x128xf32> -> vector<512x128xf32>
    %7 = arith.addf %3, %6 : vector<512x128xf32>
    %c0_6 = arith.constant 0 : index
    %c0_7 = arith.constant 0 : index
    %8 = vector.load %arg7[%c0_6, %c0_7] : memref<512x128xf32, #tpu.memory_space<vmem>>, vector<512x128xf32>
    tpu.vector_store %arg7[%c0_6, %c0_7], %7 {strides = array<i32>} : memref<512x128xf32, #tpu.memory_space<vmem>>, vector<512x128xf32>,
    %c0_i32_8 = arith.constant 0 : i32
    %9 = arith.cmpi eq, %arg2, %c0_i32_8 : i32
    %10 = arith.extui %9 : i1 to i32
    %c0_i32_9 = arith.constant 0 : i32
    %11 = arith.cmpi ne, %10, %c0_i32_9 : i32
    scf.if %11 {
      %c0_10 = arith.constant 0 : index
      %c0_11 = arith.constant 0 : index
      %12 = vector.load %arg7[%c0_10, %c0_11] : memref<512x128xf32, #tpu.memory_space<vmem>>, vector<512x128xf32>
      %c0_12 = arith.constant 0 : index
      %c0_13 = arith.constant 0 : index
      %13 = vector.load %arg5[%c0_12, %c0_13] : memref<1x128xf32, #tpu.memory_space<vmem>>, vector<1x128xf32>
      %14 = vector.broadcast %13 : vector<1x128xf32> to vector<512x128xf32>
      %15 = arith.addf %12, %14 : vector<512x128xf32>
      %cst_14 = arith.constant 0.000000e+00 : f32
      %16 = vector.broadcast %cst_14 : f32 to vector<512x128xf32>
      %17 = arith.maximumf %15, %16 : vector<512x128xf32>
      %18 = arith.truncf %17 : vector<512x128xf32> to vector<512x128xbf16>
      %c0_15 = arith.constant 0 : index
      %c0_16 = arith.constant 0 : index
      %19 = vector.load %arg6[%c0_15, %c0_16] : memref<512x128xbf16, #tpu.memory_space<vmem>>, vector<512x128xbf16>
      tpu.vector_store %arg6[%c0_15, %c0_16], %18 {strides = array<i32>} : memref<512x128xbf16, #tpu.memory_space<vmem>>, vector<512x128xbf16>,
    } else {
    }
    return
  }
  func.func @transform_0(%arg0: i32, %arg1: i32, %arg2: i32) -> (i32, i32) {
    %c0_i32 = arith.constant 0 : i32
    return %arg0, %arg2 : i32, i32
  }
  func.func @transform_1(%arg0: i32, %arg1: i32, %arg2: i32) -> (i32, i32) {
    %c0_i32 = arith.constant 0 : i32
    return %arg2, %arg1 : i32, i32
  }
  func.func @transform_2(%arg0: i32, %arg1: i32, %arg2: i32) -> (i32, i32) {
    %c0_i32 = arith.constant 0 : i32
    %c0_i32_0 = arith.constant 0 : i32
    return %c0_i32, %arg1 : i32, i32
  }
  func.func @transform_3(%arg0: i32, %arg1: i32, %arg2: i32) -> (i32, i32) {
    %c0_i32 = arith.constant 0 : i32
    return %arg0, %arg1 : i32, i32
  }
}

</mosaic_0001>

<bundles_post_ra>
// kernel: matmul_bias_act.1
= control target key start
LH: loop header
LB: loop body
LE: loop exit
PB: predicated region body
PF: predicated region fallthrough
CT: control target
= control target key end

     0   :  { %v2147_v0 = vmov 0   ;;  %s2605_s1 = inlined_call_operand.vmem [shape: bf16[256,128], index: 1, kind: input, shape index: {}]   ;;  %s2606_s0 = inlined_call_operand.vmem [shape: bf16[512,256], index: 0, kind: input, shape index: {}]   ;;  %s2607_s2 = inlined_call_operand.vmem [shape: f32[1,128], index: 2, kind: input, shape index: {}]   ;;  %s2608_s3 = inlined_call_operand.vmem [shape: bf16[512,128], index: 3, kind: output, shape index: {}]  }
   0x1   :  { %659 = vmatprep.subr.bf16.mxu0 %v2147_v0  ;;  %2002 = vmatprep.subr.bf16.mxu1 %v2147_v0  ;;  %v2035_v1 = vld [vmem:[%s2605_s1] sm:$0xff]   ;;  %v2036_v2 = vld [vmem:[%s2605_s1 + $0x8] sm:$0xff]   ;;  %v2037_v3 = vld [vmem:[%s2605_s1 + $0x10] sm:$0xff]  }
   0x2   :  { %660 = vmatpush1.bf16.msra.mxu0 %v2035_v1  ;;  %2018 = vmatpush1.bf16.msra.mxu1 %v2035_v1  ;;  %v2038_v4 = vld [vmem:[%s2605_s1 + $0x18] sm:$0xff]   ;;  %v2039_v5 = vld [vmem:[%s2605_s1 + $0x20] sm:$0xff]   ;;  %v2040_v7 = vld [vmem:[%s2605_s1 + $0x28] sm:$0xff]  }
   0x3   :  { %661 = vmatprep.subr.bf16.mxu0 %v2147_v0  ;;  %2003 = vmatprep.subr.bf16.mxu1 %v2147_v0  ;;  %v2053_v6 = vld [vmem:[%s2606_s0 + $0x4] ss:$8 sps:$4 sm:$0xff]   ;;  %v2041_v9 = vld [vmem:[%s2605_s1 + $0x30] sm:$0xff]   ;;  %v2042_v10 = vld [vmem:[%s2605_s1 + $0x38] sm:$0xff]  }
   0x4   :  { %v2056_v8 = vld [vmem:[%s2606_s0 + $0x104] ss:$8 sps:$4 sm:$0xff]   ;;  %691 = vmatprep.mubr.bf16.mxu0 %v2053_v6  ;;  %v2045_v13 = vld [vmem:[%s2605_s1 + $0x50] sm:$0xff]   ;;  %v2046_v14 = vld [vmem:[%s2605_s1 + $0x58] sm:$0xff]  }
   0x5   :  { %819 = vmatprep.mubr.bf16.mxu1 %v2056_v8  ;;  %v2043_v11 = vld [vmem:[%s2605_s1 + $0x40] sm:$0xff]   ;;  %v2044_v12 = vld [vmem:[%s2605_s1 + $0x48] sm:$0xff]   ;;  %v2049_v17 = vld [vmem:[%s2605_s1 + $0x70] sm:$0xff]  }
   0x6   :  { %662 = vmatpush1.bf16.msra.mxu0 %v2036_v2  ;;  %2019 = vmatpush1.bf16.msra.mxu1 %v2036_v2  ;;  %v2047_v15 = vld [vmem:[%s2605_s1 + $0x60] sm:$0xff]   ;;  %v2048_v16 = vld [vmem:[%s2605_s1 + $0x68] sm:$0xff]   ;;  %v2050_v18 = vld [vmem:[%s2605_s1 + $0x78] sm:$0xff]  }
   0x7   :  { %663 = vmatprep.subr.bf16.mxu0 %v2147_v0  ;;  %2004 = vmatprep.subr.bf16.mxu1 %v2147_v0  ;;  %v2051_v19 = vld [vmem:[%s2606_s0] ss:$8 sps:$4 sm:$0xff]   ;;  %v2057_v21 = vld [vmem:[%s2606_s0 + $0x14] ss:$8 sps:$4 sm:$0xff]   ;;  %v2061_v23 = vld [vmem:[%s2606_s0 + $0x10] ss:$8 sps:$4 sm:$0xff]  }
   0x8   :  { %v2054_v20 = vld [vmem:[%s2606_s0 + $0x100] ss:$8 sps:$4 sm:$0xff]   ;;  %v2059_v22 = vld [vmem:[%s2606_s0 + $0x114] ss:$8 sps:$4 sm:$0xff]   ;;  %v2062_v24 = vld [vmem:[%s2606_s0 + $0x110] ss:$8 sps:$4 sm:$0xff]  }
   0x9   :  { %v2063_v25 = vld [vmem:[%s2606_s0 + $0x24] ss:$8 sps:$4 sm:$0xff]   ;;  %v2067_v27 = vld [vmem:[%s2606_s0 + $0x20] ss:$8 sps:$4 sm:$0xff]   ;;  %v2069_v29 = vld [vmem:[%s2606_s0 + $0x34] ss:$8 sps:$4 sm:$0xff]  }
   0xa   :  { %664 = vmatpush1.bf16.msra.mxu0 %v2037_v3  ;;  %2020 = vmatpush1.bf16.msra.mxu1 %v2037_v3  ;;  %v2065_v26 = vld [vmem:[%s2606_s0 + $0x124] ss:$8 sps:$4 sm:$0xff]   ;;  %v2068_v28 = vld [vmem:[%s2606_s0 + $0x120] ss:$8 sps:$4 sm:$0xff]   ;;  %v2071_v30 = vld [vmem:[%s2606_s0 + $0x134] ss:$8 sps:$4 sm:$0xff]  }
   0xb   :  { %665 = vmatprep.subr.bf16.mxu0 %v2147_v0  ;;  %2005 = vmatprep.subr.bf16.mxu1 %v2147_v0  ;;  %v2073_v31 = vld [vmem:[%s2606_s0 + $0x30] ss:$8 sps:$4 sm:$0xff]   ;;  %v2075_v33 = vld [vmem:[%s2606_s0 + $0x44] ss:$8 sps:$4 sm:$0xff]   ;;  %v2079_v35 = vld [vmem:[%s2606_s0 + $0x40] ss:$8 sps:$4 sm:$0xff]  }
   0xc   :  { %v2074_v32 = vld [vmem:[%s2606_s0 + $0x130] ss:$8 sps:$4 sm:$0xff]   ;;  %v2077_v34 = vld [vmem:[%s2606_s0 + $0x144] ss:$8 sps:$4 sm:$0xff]   ;;  %v2080_v36 = vld [vmem:[%s2606_s0 + $0x140] ss:$8 sps:$4 sm:$0xff]  }
   0xd   :  { %v2081_v37 = vld [vmem:[%s2606_s0 + $0x54] ss:$8 sps:$4 sm:$0xff]   ;;  %v2085_v39 = vld [vmem:[%s2606_s0 + $0x50] ss:$8 sps:$4 sm:$0xff]   ;;  %v2087_v41 = vld [vmem:[%s2606_s0 + $0x64] ss:$8 sps:$4 sm:$0xff]  }
   0xe   :  { %666 = vmatpush1.bf16.msra.mxu0 %v2038_v4  ;;  %2021 = vmatpush1.bf16.msra.mxu1 %v2038_v4  ;;  %v2083_v38 = vld [vmem:[%s2606_s0 + $0x154] ss:$8 sps:$4 sm:$0xff]   ;;  %v2086_v40 = vld [vmem:[%s2606_s0 + $0x150] ss:$8 sps:$4 sm:$0xff]   ;;  %v2089_v42 = vld [vmem:[%s2606_s0 + $0x164] ss:$8 sps:$4 sm:$0xff]  }
   0xf   :  { %667 = vmatprep.subr.bf16.mxu0 %v2147_v0  ;;  %2006 = vmatprep.subr.bf16.mxu1 %v2147_v0  ;;  %v2091_v43 = vld [vmem:[%s2606_s0 + $0x60] ss:$8 sps:$4 sm:$0xff]   ;;  %v2093_v45 = vld [vmem:[%s2606_s0 + $0x74] ss:$8 sps:$4 sm:$0xff]   ;;  %v2097_v47 = vld [vmem:[%s2606_s0 + $0x70] ss:$8 sps:$4 sm:$0xff]  }
  0x10   :  { %v2092_v44 = vld [vmem:[%s2606_s0 + $0x160] ss:$8 sps:$4 sm:$0xff]   ;;  %v2095_v46 = vld [vmem:[%s2606_s0 + $0x174] ss:$8 sps:$4 sm:$0xff]   ;;  %v2098_v48 = vld [vmem:[%s2606_s0 + $0x170] ss:$8 sps:$4 sm:$0xff]  }
  0x11   :  { %v2099_v49 = vld [vmem:[%s2606_s0 + $0x84] ss:$8 sps:$4 sm:$0xff]   ;;  %v2103_v51 = vld [vmem:[%s2606_s0 + $0x80] ss:$8 sps:$4 sm:$0xff]   ;;  %v2105_v53 = vld [vmem:[%s2606_s0 + $0x94] ss:$8 sps:$4 sm:$0xff]  }
  0x12   :  { %668 = vmatpush1.bf16.msra.mxu0 %v2039_v5  ;;  %2022 = vmatpush1.bf16.msra.mxu1 %v2039_v5  ;;  %v2101_v50 = vld [vmem:[%s2606_s0 + $0x184] ss:$8 sps:$4 sm:$0xff]   ;;  %v2104_v52 = vld [vmem:[%s2606_s0 + $0x180] ss:$8 sps:$4 sm:$0xff]   ;;  %v2107_v54 = vld [vmem:[%s2606_s0 + $0x194] ss:$8 sps:$4 sm:$0xff]  }
  0x13   :  { %669 = vmatprep.subr.bf16.mxu0 %v2147_v0  ;;  %2007 = vmatprep.subr.bf16.mxu1 %v2147_v0  ;;  %v2109_v55 = vld [vmem:[%s2606_s0 + $0x90] ss:$8 sps:$4 sm:$0xff]   ;;  %v2111_v57 = vld [vmem:[%s2606_s0 + $0xa4] ss:$8 sps:$4 sm:$0xff]   ;;  %v2115_v59 = vld [vmem:[%s2606_s0 + $0xa0] ss:$8 sps:$4 sm:$0xff]  }
  0x14   :  { %v2110_v56 = vld [vmem:[%s2606_s0 + $0x190] ss:$8 sps:$4 sm:$0xff]   ;;  %v2113_v58 = vld [vmem:[%s2606_s0 + $0x1a4] ss:$8 sps:$4 sm:$0xff]   ;;  %v2116_v60 = vld [vmem:[%s2606_s0 + $0x1a0] ss:$8 sps:$4 sm:$0xff]  }
  0x15   :  { %v2117_v61 = vld [vmem:[%s2606_s0 + $0xb4] ss:$8 sps:$4 sm:$0xff]   ;;  %v2121_v63 = vld [vmem:[%s2606_s0 + $0xb0] ss:$8 sps:$4 sm:$0xff]   ;;  %v2123_v1 = vld [vmem:[%s2606_s0 + $0xc4] ss:$8 sps:$4 sm:$0xff]  }
  0x16   :  { %670 = vmatpush1.bf16.msra.mxu0 %v2040_v7  ;;  %2023 = vmatpush1.bf16.msra.mxu1 %v2040_v7  ;;  %v2119_v62 = vld [vmem:[%s2606_s0 + $0x1b4] ss:$8 sps:$4 sm:$0xff]   ;;  %v2125_v2 = vld [vmem:[%s2606_s0 + $0x1c4] ss:$8 sps:$4 sm:$0xff]   ;;  %v2127_v3 = vld [vmem:[%s2606_s0 + $0xc0] ss:$8 sps:$4 sm:$0xff]  }
  0x17   :  { %671 = vmatprep.subr.bf16.mxu0 %v2147_v0  ;;  %2008 = vmatprep.subr.bf16.mxu1 %v2147_v0  ;;  %v2128_v4 = vld [vmem:[%s2606_s0 + $0x1c0] ss:$8 sps:$4 sm:$0xff]   ;;  %v2129_v5 = vld [vmem:[%s2606_s0 + $0xd4] ss:$8 sps:$4 sm:$0xff]   ;;  %v2133_v7 = vld [vmem:[%s2606_s0 + $0xd0] ss:$8 sps:$4 sm:$0xff]  }
  0x18   :  { %v2131_v6 = vld [vmem:[%s2606_s0 + $0x1d4] ss:$8 sps:$4 sm:$0xff]   ;;  %v2134_v8 = vld [vmem:[%s2606_s0 + $0x1d0] ss:$8 sps:$4 sm:$0xff]  }
  0x1a   :  { %672 = vmatpush1.bf16.msra.mxu0 %v2041_v9  ;;  %2024 = vmatpush1.bf16.msra.mxu1 %v2041_v9  ;;  %v2135_v9 = vld [vmem:[%s2606_s0 + $0xe4] ss:$8 sps:$4 sm:$0xff]  }
  0x1b   :  { %673 = vmatprep.subr.bf16.mxu0 %v2147_v0  ;;  %2009 = vmatprep.subr.bf16.mxu1 %v2147_v0 }
  0x1e   :  { %674 = vmatpush1.bf16.msra.mxu0 %v2042_v10  ;;  %2025 = vmatpush1.bf16.msra.mxu1 %v2042_v10  ;;  %v2137_v10 = vld [vmem:[%s2606_s0 + $0x1e4] ss:$8 sps:$4 sm:$0xff]  }
  0x1f   :  { %675 = vmatprep.subr.bf16.mxu0 %v2147_v0  ;;  %2010 = vmatprep.subr.bf16.mxu1 %v2147_v0 }
  0x22   :  { %676 = vmatpush1.bf16.msra.mxu0 %v2043_v11  ;;  %2026 = vmatpush1.bf16.msra.mxu1 %v2043_v11  ;;  %v2139_v11 = vld [vmem:[%s2606_s0 + $0xe0] ss:$8 sps:$4 sm:$0xff]  }
  0x23   :  { %677 = vmatprep.subr.bf16.mxu0 %v2147_v0  ;;  %2011 = vmatprep.subr.bf16.mxu1 %v2147_v0 }
  0x26   :  { %678 = vmatpush1.bf16.msra.mxu0 %v2044_v12  ;;  %2027 = vmatpush1.bf16.msra.mxu1 %v2044_v12  ;;  %v2140_v12 = vld [vmem:[%s2606_s0 + $0x1e0] ss:$8 sps:$4 sm:$0xff]  }
  0x27   :  { %679 = vmatprep.subr.bf16.mxu0 %v2147_v0  ;;  %2012 = vmatprep.subr.bf16.mxu1 %v2147_v0 }
  0x2a   :  { %680 = vmatpush1.bf16.msra.mxu0 %v2045_v13  ;;  %2028 = vmatpush1.bf16.msra.mxu1 %v2045_v13  ;;  %v2141_v13 = vld [vmem:[%s2606_s0 + $0xf4] ss:$8 sps:$4 sm:$0xff]  }
  0x2b   :  { %681 = vmatprep.subr.bf16.mxu0 %v2147_v0  ;;  %2013 = vmatprep.subr.bf16.mxu1 %v2147_v0 }
  0x2e   :  { %682 = vmatpush1.bf16.msra.mxu0 %v2046_v14  ;;  %2029 = vmatpush1.bf16.msra.mxu1 %v2046_v14  ;;  %v2143_v14 = vld [vmem:[%s2606_s0 + $0x1f4] ss:$8 sps:$4 sm:$0xff]  }
  0x2f   :  { %683 = vmatprep.subr.bf16.mxu0 %v2147_v0  ;;  %2014 = vmatprep.subr.bf16.mxu1 %v2147_v0 }
  0x32   :  { %684 = vmatpush1.bf16.msra.mxu0 %v2047_v15  ;;  %2030 = vmatpush1.bf16.msra.mxu1 %v2047_v15  ;;  %v2145_v15 = vld [vmem:[%s2606_s0 + $0xf0] ss:$8 sps:$4 sm:$0xff]  }
  0x33   :  { %685 = vmatprep.subr.bf16.mxu0 %v2147_v0  ;;  %2015 = vmatprep.subr.bf16.mxu1 %v2147_v0 }
  0x36   :  { %686 = vmatpush1.bf16.msra.mxu0 %v2048_v16  ;;  %2031 = vmatpush1.bf16.msra.mxu1 %v2048_v16  ;;  %v2146_v16 = vld [vmem:[%s2606_s0 + $0x1f0] ss:$8 sps:$4 sm:$0xff]  }
  0x37   :  { %687 = vmatprep.subr.bf16.mxu0 %v2147_v0  ;;  %2016 = vmatprep.subr.bf16.mxu1 %v2147_v0 }
  0x3a   :  { %688 = vmatpush1.bf16.msra.mxu0 %v2049_v17  ;;  %2032 = vmatpush1.bf16.msra.mxu1 %v2049_v17  ;;  %v2443_v17 = vld [vmem:[%s2607_s2] ss:$0 sm:$0xff] }
  0x3b   :  { %689 = vmatprep.subr.bf16.mxu0 %v2147_v0  ;;  %2017 = vmatprep.subr.bf16.mxu1 %v2147_v0  ;;  %v2122_v0 = vld [vmem:[%s2606_s0 + $0x1b0] ss:$8 sps:$4 sm:$0xff]  }
  0x3e   :  { %690 = vmatpush1.bf16.msra.mxu0 %v2050_v18  ;;  %2033 = vmatpush1.bf16.msra.mxu1 %v2050_v18 }
  0x41   :  { %692 = vmatmul.mubr.bf16.vlgmr.msra.gmra.mrb[0].mxu0 %v2051_v19  ;;  %820 = vmatmul.mubr.bf16.vlgmr.msra.gmra.mrb[0].mxu1 %v2054_v20 }
  0x42   :  { %699 = vmatprep.mubr.bf16.mxu0 %v2057_v21  ;;  %827 = vmatprep.mubr.bf16.mxu1 %v2059_v22 }
  0x49   :  { %700 = vmatmul.mubr.bf16.gmra.mrb[4].mxu0 %v2061_v23  ;;  %828 = vmatmul.mubr.bf16.gmra.mrb[4].mxu1 %v2062_v24 }
  0x4a   :  { %707 = vmatprep.mubr.bf16.mxu0 %v2063_v25  ;;  %835 = vmatprep.mubr.bf16.mxu1 %v2065_v26 }
  0x51   :  { %708 = vmatmul.mubr.bf16.gmra.mrb[8].mxu0 %v2067_v27  ;;  %836 = vmatmul.mubr.bf16.gmra.mrb[8].mxu1 %v2068_v28 }
  0x52   :  { %715 = vmatprep.mubr.bf16.mxu0 %v2069_v29  ;;  %843 = vmatprep.mubr.bf16.mxu1 %v2071_v30 }
  0x59   :  { %716 = vmatmul.mubr.bf16.gmra.mrb[12].mxu0 %v2073_v31  ;;  %844 = vmatmul.mubr.bf16.gmra.mrb[12].mxu1 %v2074_v32 }
  0x5a   :  { %723 = vmatprep.mubr.bf16.mxu0 %v2075_v33  ;;  %851 = vmatprep.mubr.bf16.mxu1 %v2077_v34 }
  0x61   :  { %724 = vmatmul.mubr.bf16.gmra.mrb[16].mxu0 %v2079_v35  ;;  %852 = vmatmul.mubr.bf16.gmra.mrb[16].mxu1 %v2080_v36 }
  0x62   :  { %731 = vmatprep.mubr.bf16.mxu0 %v2081_v37  ;;  %859 = vmatprep.mubr.bf16.mxu1 %v2083_v38 }
  0x69   :  { %732 = vmatmul.mubr.bf16.gmra.mrb[20].mxu0 %v2085_v39  ;;  %860 = vmatmul.mubr.bf16.gmra.mrb[20].mxu1 %v2086_v40 }
  0x6a   :  { %739 = vmatprep.mubr.bf16.mxu0 %v2087_v41  ;;  %867 = vmatprep.mubr.bf16.mxu1 %v2089_v42 }
  0x71   :  { %740 = vmatmul.mubr.bf16.gmra.mrb[24].mxu0 %v2091_v43  ;;  %868 = vmatmul.mubr.bf16.gmra.mrb[24].mxu1 %v2092_v44 }
  0x72   :  { %747 = vmatprep.mubr.bf16.mxu0 %v2093_v45  ;;  %875 = vmatprep.mubr.bf16.mxu1 %v2095_v46 }
  0x79   :  { %748 = vmatmul.mubr.bf16.gmra.mrb[28].mxu0 %v2097_v47  ;;  %876 = vmatmul.mubr.bf16.gmra.mrb[28].mxu1 %v2098_v48 }
  0x7a   :  { %755 = vmatprep.mubr.bf16.mxu0 %v2099_v49  ;;  %883 = vmatprep.mubr.bf16.mxu1 %v2101_v50 }
  0x81   :  { %756 = vmatmul.mubr.bf16.gmra.mrb[32].mxu0 %v2103_v51  ;;  %884 = vmatmul.mubr.bf16.gmra.mrb[32].mxu1 %v2104_v52 }
  0x82   :  { %763 = vmatprep.mubr.bf16.mxu0 %v2105_v53  ;;  %891 = vmatprep.mubr.bf16.mxu1 %v2107_v54 }
  0x89   :  { %764 = vmatmul.mubr.bf16.gmra.mrb[36].mxu0 %v2109_v55  ;;  %892 = vmatmul.mubr.bf16.gmra.mrb[36].mxu1 %v2110_v56 }
  0x8a   :  { %771 = vmatprep.mubr.bf16.mxu0 %v2111_v57  ;;  %899 = vmatprep.mubr.bf16.mxu1 %v2113_v58 }
  0x91   :  { %772 = vmatmul.mubr.bf16.gmra.mrb[40].mxu0 %v2115_v59  ;;  %900 = vmatmul.mubr.bf16.gmra.mrb[40].mxu1 %v2116_v60 }
  0x92   :  { %779 = vmatprep.mubr.bf16.mxu0 %v2117_v61  ;;  %907 = vmatprep.mubr.bf16.mxu1 %v2119_v62 }
  0x99   :  { %780 = vmatmul.mubr.bf16.gmra.mrb[44].mxu0 %v2121_v63  ;;  %908 = vmatmul.mubr.bf16.gmra.mrb[44].mxu1 %v2122_v0 }
  0x9a   :  { %787 = vmatprep.mubr.bf16.mxu0 %v2123_v1  ;;  %915 = vmatprep.mubr.bf16.mxu1 %v2125_v2 }
  0xa1   :  { %788 = vmatmul.mubr.bf16.gmra.mrb[48].mxu0 %v2127_v3  ;;  %916 = vmatmul.mubr.bf16.gmra.mrb[48].mxu1 %v2128_v4 }
  0xa2   :  { %795 = vmatprep.mubr.bf16.mxu0 %v2129_v5  ;;  %923 = vmatprep.mubr.bf16.mxu1 %v2131_v6 }
  0xa9   :  { %796 = vmatmul.mubr.bf16.gmra.mrb[52].mxu0 %v2133_v7  ;;  %924 = vmatmul.mubr.bf16.gmra.mrb[52].mxu1 %v2134_v8 }
  0xaa   :  { %803 = vmatprep.mubr.bf16.mxu0 %v2135_v9  ;;  %931 = vmatprep.mubr.bf16.mxu1 %v2137_v10 }
  0xb1   :  { %804 = vmatmul.mubr.bf16.gmra.mrb[56].mxu0 %v2139_v11  ;;  %932 = vmatmul.mubr.bf16.gmra.mrb[56].mxu1 %v2140_v12 }
  0xb2   :  { %811 = vmatprep.mubr.bf16.mxu0 %v2141_v13  ;;  %939 = vmatprep.mubr.bf16.mxu1 %v2143_v14 }
  0xb9   :  { %812 = vmatmul.mubr.bf16.gmra.mrb[60].mxu0 %v2145_v15  ;;  %940 = vmatmul.mubr.bf16.gmra.mrb[60].mxu1 %v2146_v16 }
 0x114   :  { %v693_v18 = vpop.f32.mrb[0].mxu0  ;;  %v821_v19 = vpop.f32.mrb[0].mxu1 }
 0x115   :  { %v1150_v20 = vadd.f32 %v2443_v17, %v693_v18  ;;  %v1182_v21 = vadd.f32 %v2443_v17, %v821_v19  ;;  %v695_v22 = vpop.f32.mrb[1].mxu0  ;;  %v823_v23 = vpop.f32.mrb[1].mxu1 }
 0x116   :  { %v696_v24 = vpop.f32.mrb[2].mxu0  ;;  %v824_v25 = vpop.f32.mrb[2].mxu1 }
 0x117   :  { %v1151_v26 = vadd.f32 %v2443_v17, %v696_v24  ;;  %v1183_v27 = vadd.f32 %v2443_v17, %v824_v25  ;;  %v698_v28 = vpop.f32.mrb[3].mxu0  ;;  %v826_v29 = vpop.f32.mrb[3].mxu1  ;;  %v1214_v30 = vmax.f32 %v1150_v20, 0.0  ;;  %v1246_v31 = vmax.f32 %v1182_v21, 0.0 }
 0x119   :  { %v1215_v32 = vmax.f32 %v1151_v26, 0.0  ;;  %v1247_v33 = vmax.f32 %v1183_v27, 0.0 }
 0x11b   :  { %v1814_v34 = vpack.c.bf16 %v1215_v32, %v1214_v30  ;;  %v1894_v35 = vpack.c.bf16 %v1247_v33, %v1246_v31 }
 0x11c   :  { %v701_v36 = vpop.f32.mrb[4].mxu0  ;;  %v829_v37 = vpop.f32.mrb[4].mxu1 }
 0x11d   :  { %1815 = vst [vmem:[%s2608_s3] sm:$0xff] %v1814_v34   ;;  %1986 = vst [vmem:[%s2608_s3 + $0x80] sm:$0xff] %v1894_v35   ;;  %v1152_v38 = vadd.f32 %v2443_v17, %v701_v36  ;;  %v1184_v39 = vadd.f32 %v2443_v17, %v829_v37  ;;  %v703_v40 = vpop.f32.mrb[5].mxu0  ;;  %v831_v41 = vpop.f32.mrb[5].mxu1 }
 0x11e   :  { %v704_v42 = vpop.f32.mrb[6].mxu0  ;;  %v832_v43 = vpop.f32.mrb[6].mxu1 }
 0x11f   :  { %v1153_v44 = vadd.f32 %v2443_v17, %v704_v42  ;;  %v1185_v45 = vadd.f32 %v2443_v17, %v832_v43  ;;  %v706_v46 = vpop.f32.mrb[7].mxu0  ;;  %v834_v47 = vpop.f32.mrb[7].mxu1  ;;  %v1216_v48 = vmax.f32 %v1152_v38, 0.0  ;;  %v1248_v49 = vmax.f32 %v1184_v39, 0.0 }
 0x121   :  { %v1217_v50 = vmax.f32 %v1153_v44, 0.0  ;;  %v1249_v51 = vmax.f32 %v1185_v45, 0.0 }
 0x123   :  { %v1819_v52 = vpack.c.bf16 %v1217_v50, %v1216_v48  ;;  %v1899_v53 = vpack.c.bf16 %v1249_v51, %v1248_v49 }
 0x124   :  { %v709_v54 = vpop.f32.mrb[8].mxu0  ;;  %v837_v55 = vpop.f32.mrb[8].mxu1 }
 0x125   :  { %1971 = vst [vmem:[%s2608_s3 + $0x8] sm:$0xff] %v1819_v52   ;;  %1987 = vst [vmem:[%s2608_s3 + $0x88] sm:$0xff] %v1899_v53   ;;  %v1154_v56 = vadd.f32 %v2443_v17, %v709_v54  ;;  %v1186_v57 = vadd.f32 %v2443_v17, %v837_v55  ;;  %v711_v58 = vpop.f32.mrb[9].mxu0  ;;  %v839_v59 = vpop.f32.mrb[9].mxu1 }
 0x126   :  { %v712_v60 = vpop.f32.mrb[10].mxu0  ;;  %v840_v61 = vpop.f32.mrb[10].mxu1 }
 0x127   :  { %v1155_v62 = vadd.f32 %v2443_v17, %v712_v60  ;;  %v1187_v63 = vadd.f32 %v2443_v17, %v840_v61  ;;  %v714_v0 = vpop.f32.mrb[11].mxu0  ;;  %v842_v1 = vpop.f32.mrb[11].mxu1  ;;  %v1218_v2 = vmax.f32 %v1154_v56, 0.0  ;;  %v1250_v3 = vmax.f32 %v1186_v57, 0.0 }
 0x129   :  { %v1219_v4 = vmax.f32 %v1155_v62, 0.0  ;;  %v1251_v5 = vmax.f32 %v1187_v63, 0.0 }
 0x12b   :  { %v1824_v6 = vpack.c.bf16 %v1219_v4, %v1218_v2  ;;  %v1904_v7 = vpack.c.bf16 %v1251_v5, %v1250_v3 }
 0x12c   :  { %v717_v8 = vpop.f32.mrb[12].mxu0  ;;  %v845_v9 = vpop.f32.mrb[12].mxu1 }
 0x12d   :  { %1972 = vst [vmem:[%s2608_s3 + $0x10] sm:$0xff] %v1824_v6   ;;  %1988 = vst [vmem:[%s2608_s3 + $0x90] sm:$0xff] %v1904_v7   ;;  %v1156_v10 = vadd.f32 %v2443_v17, %v717_v8  ;;  %v1188_v11 = vadd.f32 %v2443_v17, %v845_v9  ;;  %v719_v12 = vpop.f32.mrb[13].mxu0  ;;  %v847_v13 = vpop.f32.mrb[13].mxu1 }
 0x12e   :  { %v720_v14 = vpop.f32.mrb[14].mxu0  ;;  %v848_v15 = vpop.f32.mrb[14].mxu1 }
 0x12f   :  { %v1157_v16 = vadd.f32 %v2443_v17, %v720_v14  ;;  %v1189_v18 = vadd.f32 %v2443_v17, %v848_v15  ;;  %v722_v19 = vpop.f32.mrb[15].mxu0  ;;  %v850_v20 = vpop.f32.mrb[15].mxu1  ;;  %v1220_v21 = vmax.f32 %v1156_v10, 0.0  ;;  %v1252_v22 = vmax.f32 %v1188_v11, 0.0 }
 0x131   :  { %v1221_v23 = vmax.f32 %v1157_v16, 0.0  ;;  %v1253_v24 = vmax.f32 %v1189_v18, 0.0 }
 0x133   :  { %v1829_v25 = vpack.c.bf16 %v1221_v23, %v1220_v21  ;;  %v1909_v26 = vpack.c.bf16 %v1253_v24, %v1252_v22 }
 0x134   :  { %v725_v27 = vpop.f32.mrb[16].mxu0  ;;  %v853_v28 = vpop.f32.mrb[16].mxu1 }
 0x135   :  { %1973 = vst [vmem:[%s2608_s3 + $0x18] sm:$0xff] %v1829_v25   ;;  %1989 = vst [vmem:[%s2608_s3 + $0x98] sm:$0xff] %v1909_v26   ;;  %v1158_v29 = vadd.f32 %v2443_v17, %v725_v27  ;;  %v1190_v30 = vadd.f32 %v2443_v17, %v853_v28  ;;  %v727_v31 = vpop.f32.mrb[17].mxu0  ;;  %v855_v32 = vpop.f32.mrb[17].mxu1 }
 0x136   :  { %v728_v33 = vpop.f32.mrb[18].mxu0  ;;  %v856_v34 = vpop.f32.mrb[18].mxu1 }
 0x137   :  { %v1159_v35 = vadd.f32 %v2443_v17, %v728_v33  ;;  %v1191_v36 = vadd.f32 %v2443_v17, %v856_v34  ;;  %v730_v37 = vpop.f32.mrb[19].mxu0  ;;  %v858_v38 = vpop.f32.mrb[19].mxu1  ;;  %v1222_v39 = vmax.f32 %v1158_v29, 0.0  ;;  %v1254_v40 = vmax.f32 %v1190_v30, 0.0 }
 0x139   :  { %v1223_v41 = vmax.f32 %v1159_v35, 0.0  ;;  %v1255_v42 = vmax.f32 %v1191_v36, 0.0 }
 0x13b   :  { %v1834_v43 = vpack.c.bf16 %v1223_v41, %v1222_v39  ;;  %v1914_v44 = vpack.c.bf16 %v1255_v42, %v1254_v40 }
 0x13c   :  { %v733_v45 = vpop.f32.mrb[20].mxu0  ;;  %v861_v46 = vpop.f32.mrb[20].mxu1 }
 0x13d   :  { %1974 = vst [vmem:[%s2608_s3 + $0x20] sm:$0xff] %v1834_v43   ;;  %1990 = vst [vmem:[%s2608_s3 + $0xa0] sm:$0xff] %v1914_v44   ;;  %v1160_v47 = vadd.f32 %v2443_v17, %v733_v45  ;;  %v1192_v48 = vadd.f32 %v2443_v17, %v861_v46  ;;  %v735_v49 = vpop.f32.mrb[21].mxu0  ;;  %v863_v50 = vpop.f32.mrb[21].mxu1 }
 0x13e   :  { %v736_v51 = vpop.f32.mrb[22].mxu0  ;;  %v864_v52 = vpop.f32.mrb[22].mxu1 }
 0x13f   :  { %v1161_v53 = vadd.f32 %v2443_v17, %v736_v51  ;;  %v1193_v54 = vadd.f32 %v2443_v17, %v864_v52  ;;  %v738_v55 = vpop.f32.mrb[23].mxu0  ;;  %v866_v56 = vpop.f32.mrb[23].mxu1  ;;  %v1224_v57 = vmax.f32 %v1160_v47, 0.0  ;;  %v1256_v58 = vmax.f32 %v1192_v48, 0.0 }
 0x141   :  { %v1225_v59 = vmax.f32 %v1161_v53, 0.0  ;;  %v1257_v60 = vmax.f32 %v1193_v54, 0.0 }
 0x143   :  { %v1839_v61 = vpack.c.bf16 %v1225_v59, %v1224_v57  ;;  %v1919_v62 = vpack.c.bf16 %v1257_v60, %v1256_v58 }
 0x144   :  { %v741_v63 = vpop.f32.mrb[24].mxu0  ;;  %v869_v0 = vpop.f32.mrb[24].mxu1 }
 0x145   :  { %1975 = vst [vmem:[%s2608_s3 + $0x28] sm:$0xff] %v1839_v61   ;;  %1991 = vst [vmem:[%s2608_s3 + $0xa8] sm:$0xff] %v1919_v62   ;;  %v1162_v1 = vadd.f32 %v2443_v17, %v741_v63  ;;  %v1194_v2 = vadd.f32 %v2443_v17, %v869_v0  ;;  %v743_v3 = vpop.f32.mrb[25].mxu0  ;;  %v871_v4 = vpop.f32.mrb[25].mxu1 }
 0x146   :  { %v744_v5 = vpop.f32.mrb[26].mxu0  ;;  %v872_v6 = vpop.f32.mrb[26].mxu1 }
 0x147   :  { %v1163_v7 = vadd.f32 %v2443_v17, %v744_v5  ;;  %v1195_v8 = vadd.f32 %v2443_v17, %v872_v6  ;;  %v746_v9 = vpop.f32.mrb[27].mxu0  ;;  %v874_v10 = vpop.f32.mrb[27].mxu1  ;;  %v1226_v11 = vmax.f32 %v1162_v1, 0.0  ;;  %v1258_v12 = vmax.f32 %v1194_v2, 0.0 }
 0x149   :  { %v1227_v13 = vmax.f32 %v1163_v7, 0.0  ;;  %v1259_v14 = vmax.f32 %v1195_v8, 0.0 }
 0x14b   :  { %v1844_v15 = vpack.c.bf16 %v1227_v13, %v1226_v11  ;;  %v1924_v16 = vpack.c.bf16 %v1259_v14, %v1258_v12 }
 0x14c   :  { %v749_v18 = vpop.f32.mrb[28].mxu0  ;;  %v877_v19 = vpop.f32.mrb[28].mxu1 }
 0x14d   :  { %1976 = vst [vmem:[%s2608_s3 + $0x30] sm:$0xff] %v1844_v15   ;;  %1992 = vst [vmem:[%s2608_s3 + $0xb0] sm:$0xff] %v1924_v16   ;;  %v1164_v20 = vadd.f32 %v2443_v17, %v749_v18  ;;  %v1196_v21 = vadd.f32 %v2443_v17, %v877_v19  ;;  %v751_v22 = vpop.f32.mrb[29].mxu0  ;;  %v879_v23 = vpop.f32.mrb[29].mxu1 }
 0x14e   :  { %v752_v24 = vpop.f32.mrb[30].mxu0  ;;  %v880_v25 = vpop.f32.mrb[30].mxu1 }
 0x14f   :  { %v1165_v26 = vadd.f32 %v2443_v17, %v752_v24  ;;  %v1197_v27 = vadd.f32 %v2443_v17, %v880_v25  ;;  %v754_v28 = vpop.f32.mrb[31].mxu0  ;;  %v882_v29 = vpop.f32.mrb[31].mxu1  ;;  %v1228_v30 = vmax.f32 %v1164_v20, 0.0  ;;  %v1260_v31 = vmax.f32 %v1196_v21, 0.0 }
 0x151   :  { %v1229_v32 = vmax.f32 %v1165_v26, 0.0  ;;  %v1261_v33 = vmax.f32 %v1197_v27, 0.0 }
 0x153   :  { %v1849_v34 = vpack.c.bf16 %v1229_v32, %v1228_v30  ;;  %v1929_v35 = vpack.c.bf16 %v1261_v33, %v1260_v31 }
 0x154   :  { %v757_v36 = vpop.f32.mrb[32].mxu0  ;;  %v885_v37 = vpop.f32.mrb[32].mxu1 }
 0x155   :  { %1977 = vst [vmem:[%s2608_s3 + $0x38] sm:$0xff] %v1849_v34   ;;  %1993 = vst [vmem:[%s2608_s3 + $0xb8] sm:$0xff] %v1929_v35   ;;  %v1166_v38 = vadd.f32 %v2443_v17, %v757_v36  ;;  %v1198_v39 = vadd.f32 %v2443_v17, %v885_v37  ;;  %v759_v40 = vpop.f32.mrb[33].mxu0  ;;  %v887_v41 = vpop.f32.mrb[33].mxu1 }
 0x156   :  { %v760_v42 = vpop.f32.mrb[34].mxu0  ;;  %v888_v43 = vpop.f32.mrb[34].mxu1 }
 0x157   :  { %v1167_v44 = vadd.f32 %v2443_v17, %v760_v42  ;;  %v1199_v45 = vadd.f32 %v2443_v17, %v888_v43  ;;  %v762_v46 = vpop.f32.mrb[35].mxu0  ;;  %v890_v47 = vpop.f32.mrb[35].mxu1  ;;  %v1230_v48 = vmax.f32 %v1166_v38, 0.0  ;;  %v1262_v49 = vmax.f32 %v1198_v39, 0.0 }
 0x159   :  { %v1231_v50 = vmax.f32 %v1167_v44, 0.0  ;;  %v1263_v51 = vmax.f32 %v1199_v45, 0.0 }
 0x15b   :  { %v1854_v52 = vpack.c.bf16 %v1231_v50, %v1230_v48  ;;  %v1934_v53 = vpack.c.bf16 %v1263_v51, %v1262_v49 }
 0x15c   :  { %v765_v54 = vpop.f32.mrb[36].mxu0  ;;  %v893_v55 = vpop.f32.mrb[36].mxu1 }
 0x15d   :  { %1978 = vst [vmem:[%s2608_s3 + $0x40] sm:$0xff] %v1854_v52   ;;  %1994 = vst [vmem:[%s2608_s3 + $0xc0] sm:$0xff] %v1934_v53   ;;  %v1168_v56 = vadd.f32 %v2443_v17, %v765_v54  ;;  %v1200_v57 = vadd.f32 %v2443_v17, %v893_v55  ;;  %v767_v58 = vpop.f32.mrb[37].mxu0  ;;  %v895_v59 = vpop.f32.mrb[37].mxu1 }
 0x15e   :  { %v768_v60 = vpop.f32.mrb[38].mxu0  ;;  %v896_v61 = vpop.f32.mrb[38].mxu1 }
 0x15f   :  { %v1169_v62 = vadd.f32 %v2443_v17, %v768_v60  ;;  %v1201_v63 = vadd.f32 %v2443_v17, %v896_v61  ;;  %v770_v0 = vpop.f32.mrb[39].mxu0  ;;  %v898_v1 = vpop.f32.mrb[39].mxu1  ;;  %v1232_v2 = vmax.f32 %v1168_v56, 0.0  ;;  %v1264_v3 = vmax.f32 %v1200_v57, 0.0 }
 0x161   :  { %v1233_v4 = vmax.f32 %v1169_v62, 0.0  ;;  %v1265_v5 = vmax.f32 %v1201_v63, 0.0 }
 0x163   :  { %v1859_v6 = vpack.c.bf16 %v1233_v4, %v1232_v2  ;;  %v1939_v7 = vpack.c.bf16 %v1265_v5, %v1264_v3 }
 0x164   :  { %v773_v8 = vpop.f32.mrb[40].mxu0  ;;  %v901_v9 = vpop.f32.mrb[40].mxu1 }
 0x165   :  { %1979 = vst [vmem:[%s2608_s3 + $0x48] sm:$0xff] %v1859_v6   ;;  %1995 = vst [vmem:[%s2608_s3 + $0xc8] sm:$0xff] %v1939_v7   ;;  %v1170_v10 = vadd.f32 %v2443_v17, %v773_v8  ;;  %v1202_v11 = vadd.f32 %v2443_v17, %v901_v9  ;;  %v775_v12 = vpop.f32.mrb[41].mxu0  ;;  %v903_v13 = vpop.f32.mrb[41].mxu1 }
 0x166   :  { %v776_v14 = vpop.f32.mrb[42].mxu0  ;;  %v904_v15 = vpop.f32.mrb[42].mxu1 }
 0x167   :  { %v1171_v16 = vadd.f32 %v2443_v17, %v776_v14  ;;  %v1203_v18 = vadd.f32 %v2443_v17, %v904_v15  ;;  %v778_v19 = vpop.f32.mrb[43].mxu0  ;;  %v906_v20 = vpop.f32.mrb[43].mxu1  ;;  %v1234_v21 = vmax.f32 %v1170_v10, 0.0  ;;  %v1266_v22 = vmax.f32 %v1202_v11, 0.0 }
 0x169   :  { %v1235_v23 = vmax.f32 %v1171_v16, 0.0  ;;  %v1267_v24 = vmax.f32 %v1203_v18, 0.0 }
 0x16b   :  { %v1864_v25 = vpack.c.bf16 %v1235_v23, %v1234_v21  ;;  %v1944_v26 = vpack.c.bf16 %v1267_v24, %v1266_v22 }
 0x16c   :  { %v781_v27 = vpop.f32.mrb[44].mxu0  ;;  %v909_v28 = vpop.f32.mrb[44].mxu1 }
 0x16d   :  { %1980 = vst [vmem:[%s2608_s3 + $0x50] sm:$0xff] %v1864_v25   ;;  %1996 = vst [vmem:[%s2608_s3 + $0xd0] sm:$0xff] %v1944_v26   ;;  %v1172_v29 = vadd.f32 %v2443_v17, %v781_v27  ;;  %v1204_v30 = vadd.f32 %v2443_v17, %v909_v28  ;;  %v783_v31 = vpop.f32.mrb[45].mxu0  ;;  %v911_v32 = vpop.f32.mrb[45].mxu1 }
 0x16e   :  { %v784_v33 = vpop.f32.mrb[46].mxu0  ;;  %v912_v34 = vpop.f32.mrb[46].mxu1 }
 0x16f   :  { %v1173_v35 = vadd.f32 %v2443_v17, %v784_v33  ;;  %v1205_v36 = vadd.f32 %v2443_v17, %v912_v34  ;;  %v786_v37 = vpop.f32.mrb[47].mxu0  ;;  %v914_v38 = vpop.f32.mrb[47].mxu1  ;;  %v1236_v39 = vmax.f32 %v1172_v29, 0.0  ;;  %v1268_v40 = vmax.f32 %v1204_v30, 0.0 }
 0x171   :  { %v1237_v41 = vmax.f32 %v1173_v35, 0.0  ;;  %v1269_v42 = vmax.f32 %v1205_v36, 0.0 }
 0x173   :  { %v1869_v43 = vpack.c.bf16 %v1237_v41, %v1236_v39  ;;  %v1949_v44 = vpack.c.bf16 %v1269_v42, %v1268_v40 }
 0x174   :  { %v789_v45 = vpop.f32.mrb[48].mxu0  ;;  %v917_v46 = vpop.f32.mrb[48].mxu1 }
 0x175   :  { %1981 = vst [vmem:[%s2608_s3 + $0x58] sm:$0xff] %v1869_v43   ;;  %1997 = vst [vmem:[%s2608_s3 + $0xd8] sm:$0xff] %v1949_v44   ;;  %v1174_v47 = vadd.f32 %v2443_v17, %v789_v45  ;;  %v1206_v48 = vadd.f32 %v2443_v17, %v917_v46  ;;  %v791_v49 = vpop.f32.mrb[49].mxu0  ;;  %v919_v50 = vpop.f32.mrb[49].mxu1 }
 0x176   :  { %v792_v51 = vpop.f32.mrb[50].mxu0  ;;  %v920_v52 = vpop.f32.mrb[50].mxu1 }
 0x177   :  { %v1175_v53 = vadd.f32 %v2443_v17, %v792_v51  ;;  %v1207_v54 = vadd.f32 %v2443_v17, %v920_v52  ;;  %v794_v55 = vpop.f32.mrb[51].mxu0  ;;  %v922_v56 = vpop.f32.mrb[51].mxu1  ;;  %v1238_v57 = vmax.f32 %v1174_v47, 0.0  ;;  %v1270_v58 = vmax.f32 %v1206_v48, 0.0 }
 0x179   :  { %v1239_v59 = vmax.f32 %v1175_v53, 0.0  ;;  %v1271_v60 = vmax.f32 %v1207_v54, 0.0 }
 0x17b   :  { %v1874_v61 = vpack.c.bf16 %v1239_v59, %v1238_v57  ;;  %v1954_v62 = vpack.c.bf16 %v1271_v60, %v1270_v58 }
 0x17c   :  { %v797_v63 = vpop.f32.mrb[52].mxu0  ;;  %v925_v0 = vpop.f32.mrb[52].mxu1 }
 0x17d   :  { %1982 = vst [vmem:[%s2608_s3 + $0x60] sm:$0xff] %v1874_v61   ;;  %1998 = vst [vmem:[%s2608_s3 + $0xe0] sm:$0xff] %v1954_v62   ;;  %v1176_v1 = vadd.f32 %v2443_v17, %v797_v63  ;;  %v1208_v2 = vadd.f32 %v2443_v17, %v925_v0  ;;  %v799_v3 = vpop.f32.mrb[53].mxu0  ;;  %v927_v4 = vpop.f32.mrb[53].mxu1 }
 0x17e   :  { %v800_v5 = vpop.f32.mrb[54].mxu0  ;;  %v928_v6 = vpop.f32.mrb[54].mxu1 }
 0x17f   :  { %v1177_v7 = vadd.f32 %v2443_v17, %v800_v5  ;;  %v1209_v8 = vadd.f32 %v2443_v17, %v928_v6  ;;  %v802_v9 = vpop.f32.mrb[55].mxu0  ;;  %v930_v10 = vpop.f32.mrb[55].mxu1  ;;  %v1240_v11 = vmax.f32 %v1176_v1, 0.0  ;;  %v1272_v12 = vmax.f32 %v1208_v2, 0.0 }
 0x181   :  { %v1241_v13 = vmax.f32 %v1177_v7, 0.0  ;;  %v1273_v14 = vmax.f32 %v1209_v8, 0.0 }
 0x183   :  { %v1879_v15 = vpack.c.bf16 %v1241_v13, %v1240_v11  ;;  %v1959_v16 = vpack.c.bf16 %v1273_v14, %v1272_v12 }
 0x184   :  { %v805_v18 = vpop.f32.mrb[56].mxu0  ;;  %v933_v19 = vpop.f32.mrb[56].mxu1 }
 0x185   :  { %1983 = vst [vmem:[%s2608_s3 + $0x68] sm:$0xff] %v1879_v15   ;;  %1999 = vst [vmem:[%s2608_s3 + $0xe8] sm:$0xff] %v1959_v16   ;;  %v1178_v20 = vadd.f32 %v2443_v17, %v805_v18  ;;  %v1210_v21 = vadd.f32 %v2443_v17, %v933_v19  ;;  %v807_v22 = vpop.f32.mrb[57].mxu0  ;;  %v935_v23 = vpop.f32.mrb[57].mxu1 }
 0x186   :  { %v808_v24 = vpop.f32.mrb[58].mxu0  ;;  %v936_v25 = vpop.f32.mrb[58].mxu1 }
 0x187   :  { %v1179_v26 = vadd.f32 %v2443_v17, %v808_v24  ;;  %v1211_v27 = vadd.f32 %v2443_v17, %v936_v25  ;;  %v810_v28 = vpop.f32.mrb[59].mxu0  ;;  %v938_v29 = vpop.f32.mrb[59].mxu1  ;;  %v1242_v30 = vmax.f32 %v1178_v20, 0.0  ;;  %v1274_v31 = vmax.f32 %v1210_v21, 0.0 }
 0x189   :  { %v1243_v32 = vmax.f32 %v1179_v26, 0.0  ;;  %v1275_v33 = vmax.f32 %v1211_v27, 0.0 }
 0x18b   :  { %v1884_v34 = vpack.c.bf16 %v1243_v32, %v1242_v30  ;;  %v1964_v35 = vpack.c.bf16 %v1275_v33, %v1274_v31 }
 0x18c   :  { %v813_v36 = vpop.f32.mrb[60].mxu0  ;;  %v941_v37 = vpop.f32.mrb[60].mxu1 }
 0x18d   :  { %1984 = vst [vmem:[%s2608_s3 + $0x70] sm:$0xff] %v1884_v34   ;;  %2000 = vst [vmem:[%s2608_s3 + $0xf0] sm:$0xff] %v1964_v35   ;;  %v1180_v38 = vadd.f32 %v2443_v17, %v813_v36  ;;  %v1212_v39 = vadd.f32 %v2443_v17, %v941_v37  ;;  %v815_v40 = vpop.f32.mrb[61].mxu0  ;;  %v943_v41 = vpop.f32.mrb[61].mxu1 }
 0x18e   :  { %v816_v42 = vpop.f32.mrb[62].mxu0  ;;  %v944_v43 = vpop.f32.mrb[62].mxu1 }
 0x18f   :  { %v1181_v44 = vadd.f32 %v2443_v17, %v816_v42  ;;  %v1213_v45 = vadd.f32 %v2443_v17, %v944_v43  ;;  %v818_v46 = vpop.f32.mrb[63].mxu0  ;;  %v946_v47 = vpop.f32.mrb[63].mxu1  ;;  %v1244_v48 = vmax.f32 %v1180_v38, 0.0  ;;  %v1276_v49 = vmax.f32 %v1212_v39, 0.0 }
 0x191   :  { %v1245_v50 = vmax.f32 %v1181_v44, 0.0  ;;  %v1277_v51 = vmax.f32 %v1213_v45, 0.0 }
 0x193   :  { %v1889_v52 = vpack.c.bf16 %v1245_v50, %v1244_v48  ;;  %v1969_v53 = vpack.c.bf16 %v1277_v51, %v1276_v49 }
 0x195   :  { %1985 = vst [vmem:[%s2608_s3 + $0x78] sm:$0xff] %v1889_v52   ;;  %2001 = vst [vmem:[%s2608_s3 + $0xf8] sm:$0xff] %v1969_v53  }

</bundles_post_ra>
